<compile_context>
chip_gen: v6e
topology: v6e:2x2x1
jax: 0.10.0
libtpu: 0.0.40
codegen_flags: <defaults>
</compile_context>

<pallas_src>
import jax
import jax.numpy as jnp
from jax.experimental import pallas as pl
from jax.experimental.pallas import tpu as pltpu


def mlp_kernel(x_ref, w1_ref, b1_ref, w2_ref, b2_ref, o_ref):
    # x_ref : (C_in,  tm)  bf16     w1_ref: (C_hid, C_in)  bf16   b1_ref: (C_hid, 1) f32
    # w2_ref: (C_out, C_hid) bf16   b2_ref: (C_out, 1) f32        o_ref : (C_out, tm) f32
    h = jnp.dot(w1_ref[...], x_ref[...], preferred_element_type=jnp.float32)
    h = h + b1_ref[...]                      # folded BN #1 (scale already in w1)
    h = jax.nn.gelu(h, approximate=True)     # tanh GELU -> EUP slot (VALU was binding)
    y = jnp.dot(w2_ref[...], h.astype(jnp.bfloat16),
                preferred_element_type=jnp.float32)
    o_ref[...] = (y + b2_ref[...]).astype(o_ref.dtype)   # folded BN #2


def _vmem_capacity_bytes():
    try:
        return int(pltpu.get_tpu_info().vmem_capacity_bytes)
    except Exception:
        return 64 * 1024 * 1024   # conservative (v7x per-TC)


def _pick_tm(HW, N, C_in, C_hid, C_out, vmem_budget):
    """Largest legal lane-tile that fits the per-step VMEM footprint."""
    # Per lane column of the spatial tile:
    #   2x double-buffered bf16 x, 2x double-buffered f32 out,
    #   live f32 hidden activation + GELU temporaries (~3x C_hid).
    per_lane = 2 * C_in * 2 + 2 * C_out * 4 + 3 * C_hid * 4
    # Single-buffered bf16 weights + f32 biases (grid-invariant).
    weight_bytes = (C_hid * C_in + C_out * C_hid) * 2 + (C_hid + C_out) * 4
    avail = max(vmem_budget - weight_bytes - (1 << 20), 128 * per_lane)
    tm_cap = max(128, min(avail // per_lane, 8192))
    tm_cap -= tm_cap % 128

    if HW <= tm_cap:
        tm = HW                                  # whole image: always a legal block
        if N < 2 and HW > 128:
            # Split spatially so both v7x TensorCores get a grid step.
            tm = ((HW + 1) // 2 + 127) // 128 * 128
    else:
        tm = tm_cap                              # multiple of 128; ragged tail masked
    return tm


def mlp_pallas(x_nchw, w1t_eff, b1, w2t_eff, b2):
    """x_nchw: (N, C_in, H, W) float32.
    w1t_eff: (C_hid, C_in)  = diag(bn1_scale) @ W1^T   (BN folded into weight)
    b1     : (C_hid, 1)     = folded BN #1 bias
    w2t_eff: (C_out, C_hid) = diag(bn2_scale) @ W2^T
    b2     : (C_out, 1)     = folded BN #2 bias
    Returns (N, C_out, H, W) float32; no transposes, x/weights fed to the MXU in bf16."""
    N, C_in, H, W = x_nchw.shape
    HW = H * W
    C_hid = w1t_eff.shape[0]
    C_out = w2t_eff.shape[0]

    # Device-aware VMEM budget (v5e/v6e: 128 MiB physical -> ~96 MiB scoped;
    # v7x: 64 MiB physical -> ~48 MiB scoped).
    vmem_cap = _vmem_capacity_bytes()
    vmem_budget = min((vmem_cap * 3) // 4, 100 * (1 << 20))
    tm = _pick_tm(HW, N, C_in, C_hid, C_out, vmem_budget)
    grid = (N, pl.cdiv(HW, tm))

    # NCHW viewed as (N, C_in, H*W): pure reshape, no data movement.
    # bf16 cast halves x-side HBM traffic and feeds the MXU its native dtype.
    x3d = x_nchw.reshape(N, C_in, HW).astype(jnp.bfloat16)
    w1_bf = w1t_eff.astype(jnp.bfloat16)
    w2_bf = w2t_eff.astype(jnp.bfloat16)
    b1_f = b1.astype(jnp.float32)
    b2_f = b2.astype(jnp.float32)

    const = pl.Buffered(1)   # grid-invariant operands: no double buffering

    out3d = pl.pallas_call(
        mlp_kernel,
        out_shape=jax.ShapeDtypeStruct((N, C_out, HW), jnp.float32),
        grid_spec=pltpu.PrefetchScalarGridSpec(
            num_scalar_prefetch=0,
            grid=grid,
            in_specs=[
                pl.BlockSpec((None, C_in, tm), lambda n, i: (n, 0, i)),
                pl.BlockSpec((C_hid, C_in), lambda n, i: (0, 0), pipeline_mode=const),
                pl.BlockSpec((C_hid, 1), lambda n, i: (0, 0), pipeline_mode=const),
                pl.BlockSpec((C_out, C_hid), lambda n, i: (0, 0), pipeline_mode=const),
                pl.BlockSpec((C_out, 1), lambda n, i: (0, 0), pipeline_mode=const),
            ],
            out_specs=pl.BlockSpec((None, C_out, tm), lambda n, i: (n, 0, i)),
        ),
        compiler_params=pltpu.CompilerParams(
            dimension_semantics=("parallel", "parallel"),
            vmem_limit_bytes=int(vmem_budget)),
    )(x3d, w1_bf, b1_f, w2_bf, b2_f)

    return out3d.reshape(N, C_out, H, W)


def fold_bn(gamma, beta, mean, var, eps=1e-5):
    """Return (scale, bias) so that BN(y) = y*scale + bias (inference mode)."""
    scale = gamma / jnp.sqrt(var + eps)
    bias = beta - mean * scale
    return scale, bias


def reference_jax(x_nchw, w1t, s1, b1, w2t, s2, b2):
    # Unfolded f32 reference in NCHW with exact-erf GELU (nn.GELU() semantics).
    h = jnp.einsum("dc,nchw->ndhw", w1t, x_nchw)
    h = h * s1.reshape(1, -1, 1, 1) + b1.reshape(1, -1, 1, 1)
    h = jax.nn.gelu(h, approximate=False)
    y = jnp.einsum("ed,ndhw->nehw", w2t, h)
    y = y * s2.reshape(1, -1, 1, 1) + b2.reshape(1, -1, 1, 1)
    return y


if __name__ == "__main__":
    key = jax.random.PRNGKey(0)
    N, C_in, H, W = 2, 4, 16, 16
    C_hid, C_out = 8, 4  # hidden_channels=8, out_channels defaults to in_channels

    keys = jax.random.split(key, 12)
    x = jax.random.normal(keys[0], (N, C_in, H, W), jnp.float32)

    # Conv2d(k=1, bias=False) weights stored transposed: (C_out_of_layer, C_in_of_layer).
    w1t = jax.random.normal(keys[1], (C_hid, C_in), jnp.float32) * 0.1
    w2t = jax.random.normal(keys[2], (C_out, C_hid), jnp.float32) * 0.1

    # Deterministic BatchNorm parameters (inference / folded).
    g1 = 1.0 + 0.1 * jax.random.normal(keys[3], (C_hid,), jnp.float32)
    be1 = 0.1 * jax.random.normal(keys[4], (C_hid,), jnp.float32)
    m1 = 0.1 * jax.random.normal(keys[5], (C_hid,), jnp.float32)
    v1 = 1.0 + 0.1 * jax.random.uniform(keys[6], (C_hid,), jnp.float32)
    g2 = 1.0 + 0.1 * jax.random.normal(keys[7], (C_out,), jnp.float32)
    be2 = 0.1 * jax.random.normal(keys[8], (C_out,), jnp.float32)
    m2 = 0.1 * jax.random.normal(keys[9], (C_out,), jnp.float32)
    v2 = 1.0 + 0.1 * jax.random.uniform(keys[10], (C_out,), jnp.float32)

    s1, b1 = fold_bn(g1, be1, m1, v1)
    s2, b2 = fold_bn(g2, be2, m2, v2)

    # Fold BN scales into the weights (exact): (x @ W)*s == x @ (W*diag(s)).
    w1t_eff = w1t * s1[:, None]
    w2t_eff = w2t * s2[:, None]
    b1_col = b1.reshape(C_hid, 1)
    b2_col = b2.reshape(C_out, 1)

    out = mlp_pallas(x, w1t_eff, b1_col, w2t_eff, b2_col)
    out = jax.block_until_ready(out)

    ref = reference_jax(x, w1t, s1, b1, w2t, s2, b2)
    assert out.shape == (N, C_out, H, W)
    # Tolerance loosened for bf16 MXU inputs + tanh-approx GELU (per perf review).
    assert jnp.max(jnp.abs(out - ref)) < 2e-2

    print("KERNEL_OK")
</pallas_src>

<mosaic_0001>
module attributes {stable_mosaic.version = 11 : i64} {
  func.func @mlp_kernel(%arg0: i32, %arg1: i32, %arg2: memref<1x4x256xbf16, #tpu.memory_space<vmem>>, %arg3: memref<8x4xbf16, #tpu.memory_space<vmem>>, %arg4: memref<8x1xf32, #tpu.memory_space<vmem>>, %arg5: memref<4x8xbf16, #tpu.memory_space<vmem>>, %arg6: memref<4x1xf32, #tpu.memory_space<vmem>>, %arg7: memref<1x4x256xf32, #tpu.memory_space<vmem>>) attributes {dimension_semantics = [#tpu.dimension_semantics<parallel>, #tpu.dimension_semantics<parallel>], iteration_bounds = array<i64: 2, 1>, scalar_prefetch = 0 : i64, scratch_operands = 0 : i64, tpu.core_type = #tpu.core_type<tc>, window_params = [{transform_indices = @transform_0, window_bounds = array<i64: 1, 4, 256>}, {pipeline_mode = #tpu.pipeline_mode<synchronous>, transform_indices = @transform_1, window_bounds = array<i64: 8, 4>}, {pipeline_mode = #tpu.pipeline_mode<synchronous>, transform_indices = @transform_2, window_bounds = array<i64: 8, 1>}, {pipeline_mode = #tpu.pipeline_mode<synchronous>, transform_indices = @transform_3, window_bounds = array<i64: 4, 8>}, {pipeline_mode = #tpu.pipeline_mode<synchronous>, transform_indices = @transform_4, window_bounds = array<i64: 4, 1>}, {transform_indices = @transform_5, window_bounds = array<i64: 1, 4, 256>}]} {
    %c0 = arith.constant 0 : index
    %c0_0 = arith.constant 0 : index
    %0 = vector.load %arg3[%c0, %c0_0] : memref<8x4xbf16, #tpu.memory_space<vmem>>, vector<8x4xbf16>
    %c0_1 = arith.constant 0 : index
    %c0_2 = arith.constant 0 : index
    %c0_3 = arith.constant 0 : index
    %1 = vector.load %arg2[%c0_1, %c0_2, %c0_3] : memref<1x4x256xbf16, #tpu.memory_space<vmem>>, vector<1x4x256xbf16>
    %2 = vector.shape_cast %1 : vector<1x4x256xbf16> to vector<4x256xbf16>
    %cst = arith.constant dense<0.000000e+00> : vector<8x256xf32>
    %3 = tpu.matmul %0, %2, %cst {dimension_numbers = #tpu.dot_dimension_numbers<[1], [0], [0], [1], [0, 0, 1, 1], [], []>} : vector<8x4xbf16>, vector<4x256xbf16>, vector<8x256xf32> -> vector<8x256xf32>
    %c0_4 = arith.constant 0 : index
    %c0_5 = arith.constant 0 : index
    %4 = vector.load %arg4[%c0_4, %c0_5] : memref<8x1xf32, #tpu.memory_space<vmem>>, vector<8x1xf32>
    %5 = vector.broadcast %4 : vector<8x1xf32> to vector<8x256xf32>
    %6 = arith.addf %3, %5 : vector<8x256xf32>
    %7 = arith.mulf %6, %6 : vector<8x256xf32>
    %8 = arith.mulf %6, %7 : vector<8x256xf32>
    %cst_6 = arith.constant 4.471500e-02 : f32
    %9 = vector.broadcast %cst_6 : f32 to vector<8x256xf32>
    %10 = arith.mulf %9, %8 : vector<8x256xf32>
    %11 = arith.addf %6, %10 : vector<8x256xf32>
    %cst_7 = arith.constant 0.797884583 : f32
    %12 = vector.broadcast %cst_7 : f32 to vector<8x256xf32>
    %13 = arith.mulf %12, %11 : vector<8x256xf32>
    %14 = math.tanh %13 : vector<8x256xf32>
    %cst_8 = arith.constant 1.000000e+00 : f32
    %15 = vector.broadcast %cst_8 : f32 to vector<8x256xf32>
    %16 = arith.addf %15, %14 : vector<8x256xf32>
    %cst_9 = arith.constant 5.000000e-01 : f32
    %17 = vector.broadcast %cst_9 : f32 to vector<8x256xf32>
    %18 = arith.mulf %17, %16 : vector<8x256xf32>
    %19 = arith.mulf %6, %18 : vector<8x256xf32>
    %c0_10 = arith.constant 0 : index
    %c0_11 = arith.constant 0 : index
    %20 = vector.load %arg5[%c0_10, %c0_11] : memref<4x8xbf16, #tpu.memory_space<vmem>>, vector<4x8xbf16>
    %21 = arith.truncf %19 : vector<8x256xf32> to vector<8x256xbf16>
    %cst_12 = arith.constant dense<0.000000e+00> : vector<4x256xf32>
    %22 = tpu.matmul %20, %21, %cst_12 {dimension_numbers = #tpu.dot_dimension_numbers<[1], [0], [0], [1], [0, 0, 1, 1], [], []>} : vector<4x8xbf16>, vector<8x256xbf16>, vector<4x256xf32> -> vector<4x256xf32>
    %c0_13 = arith.constant 0 : index
    %c0_14 = arith.constant 0 : index
    %23 = vector.load %arg6[%c0_13, %c0_14] : memref<4x1xf32, #tpu.memory_space<vmem>>, vector<4x1xf32>
    %24 = vector.broadcast %23 : vector<4x1xf32> to vector<4x256xf32>
    %25 = arith.addf %22, %24 : vector<4x256xf32>
    %c0_15 = arith.constant 0 : index
    %c0_16 = arith.constant 0 : index
    %c0_17 = arith.constant 0 : index
    %26 = vector.load %arg7[%c0_15, %c0_16, %c0_17] : memref<1x4x256xf32, #tpu.memory_space<vmem>>, vector<1x4x256xf32>
    %27 = vector.shape_cast %26 : vector<1x4x256xf32> to vector<4x256xf32>
    %28 = vector.shape_cast %25 : vector<4x256xf32> to vector<1x4x256xf32>
    tpu.vector_store %arg7[%c0_15, %c0_16, %c0_17], %28 {strides = array<i32>} : memref<1x4x256xf32, #tpu.memory_space<vmem>>, vector<1x4x256xf32>,
    return
  }
  func.func @transform_0(%arg0: i32, %arg1: i32) -> (i32, i32, i32) {
    %c0_i32 = arith.constant 0 : i32
    %c0_i32_0 = arith.constant 0 : i32
    return %arg0, %c0_i32, %arg1 : i32, i32, i32
  }
  func.func @transform_1(%arg0: i32, %arg1: i32) -> (i32, i32) {
    %c0_i32 = arith.constant 0 : i32
    %c0_i32_0 = arith.constant 0 : i32
    %c0_i32_1 = arith.constant 0 : i32
    return %c0_i32, %c0_i32_0 : i32, i32
  }
  func.func @transform_2(%arg0: i32, %arg1: i32) -> (i32, i32) {
    %c0_i32 = arith.constant 0 : i32
    %c0_i32_0 = arith.constant 0 : i32
    %c0_i32_1 = arith.constant 0 : i32
    return %c0_i32, %c0_i32_0 : i32, i32
  }
  func.func @transform_3(%arg0: i32, %arg1: i32) -> (i32, i32) {
    %c0_i32 = arith.constant 0 : i32
    %c0_i32_0 = arith.constant 0 : i32
    %c0_i32_1 = arith.constant 0 : i32
    return %c0_i32, %c0_i32_0 : i32, i32
  }
  func.func @transform_4(%arg0: i32, %arg1: i32) -> (i32, i32) {
    %c0_i32 = arith.constant 0 : i32
    %c0_i32_0 = arith.constant 0 : i32
    %c0_i32_1 = arith.constant 0 : i32
    return %c0_i32, %c0_i32_0 : i32, i32
  }
  func.func @transform_5(%arg0: i32, %arg1: i32) -> (i32, i32, i32) {
    %c0_i32 = arith.constant 0 : i32
    %c0_i32_0 = arith.constant 0 : i32
    return %arg0, %c0_i32, %arg1 : i32, i32, i32
  }
}

</mosaic_0001>

<bundles_post_ra>
// kernel: tpu_custom_call.1
= control target key start
LH: loop header
LB: loop body
LE: loop exit
PB: predicated region body
PF: predicated region fallthrough
CT: control target
= control target key end

     0   :  { %10 = vsyncpa [#allocation3], 0  ;;  %s809_s0 = inlined_call_operand.vmem [shape: bf16[2,4,256], index: 0, kind: input, shape index: {}]   ;;  %s810_s1 = inlined_call_operand.vmem [shape: bf16[8,4], index: 1, kind: input, shape index: {}]   ;;  %s811_s2 = inlined_call_operand.vmem [shape: f32[8,1], index: 2, kind: input, shape index: {}]   ;;  %s812_s3 = inlined_call_operand.vmem [shape: bf16[4,8], index: 3, kind: input, shape index: {}]   ;;  %s813_s4 = inlined_call_operand.vmem [shape: f32[4,1], index: 4, kind: input, shape index: {}]   ;;  %s814_s5 = inlined_call_operand.hbm [shape: f32[2,4,256], index: 5, kind: output, shape index: {}]  }
   0x1   :  { %12 = vsyncpa [#allocation3 + $0x1], 0  ;;  %s692_s18 = smov 0   ;;  %s694_s19 = smov 0  }
   0x2   :  { %s696_s20 = smov 0   ;;  %s698_s21 = smov 0  }
   0x3   :  { %s700_s22 = smov 0   ;;  %s702_s23 = smov 0  }
   0x4 LB: > { %s501_s24 = sadd.s32 4294967295, %s658_s23   ;;  %s502_s25 = sadd.s32 4294967294, %s658_s23   ;;  %s658_s23 = sphi %s702_s23, %s18_s23   ;;  %s654_s22 = sphi %s700_s22, %s821_s22   ;;  %s650_s21 = sphi %s698_s21, %s820_s21   ;;  %s646_s20 = sphi %s696_s20, %s819_s20   ;;  %s642_s19 = sphi %s694_s19, %s818_s19   ;;  %s638_s18 = sphi %s692_s18, %s817_s18  }
   0x5   : > { %s30_s26 = sadd.s32 1, %s654_s22  ;;  %s151_s27 = sadd.s32 1, %s646_s20 }
   0x6   : > { %p32_p0 = scmp.ge.s32.totalorder %s30_s26, 2  ;;  %p161_p1 = scmp.ne.s32.totalorder %s646_s20, %s642_s19 }
   0x7   : > { %p162_p2 = scmp.eq.s32.totalorder %s501_s24, 1  ;;  %p167_p3 = scmp.ne.s32.totalorder %s642_s19, %s638_s18 }
   0x8   : > { %s823_s26 = smov (%p32_p0, %s30_s26), 0  ;;  %p168_p5 = scmp.eq.s32.totalorder %s502_s25, 1 }
   0x9   : > { %p732_p4 = por %p162_p2, %p161_p1  ;;  %s146_s29 = ssub.s32 %s654_s22, %s823_s26 }
   0xa   : > { %p505_p6 = scmp.ge.s32.totalorder %s658_s23, 1  ;;  %p149_p7 = scmp.eq.s32.totalorder %s146_s29, 0 }
   0xb   : > { %p739_p8 = por %p168_p5, %p167_p3  ;;  %p211_p9 = scmp.lt.s32.totalorder %s658_s23, 3 }
   0xc   : > { %s745_s6 = scalar_select %p149_p7, %s646_s20, %s151_s27  }
   0xd   : > { %p212_p10 = pnand %p505_p6, %p211_p9 }
   0xe   : > { %p244_p11 = scmp.lt.s32.totalorder (!%p212_p10), %s650_s21, 1  ;;  %s240_s27 = sand.u32 (!%p212_p10), 1, %s642_s19  }
   0xf   : > { %215 = sbr.rel (%p212_p10) target bundleno = 476 (0x1dc), region = 40  ;;  %s506_s29 = sshll.u32 (!%p212_p10), %s240_s27, 3 }
  0x10   : > { %s520_s7 = sshll.u32 (!%p212_p10), %s650_s21, 7  ;;  %s242_s8 = scalar_lea.vmem (!%p212_p10), [#allocation2], %s506_s29 }
  0x11   : > { %s409_s13 = scalar_lea.sflag (!%p212_p10), [#allocation3], %s240_s27 }
  0x14   : > { %v660_v0 = vmov 0   ;;  %v257_v1 = vld [vmem:[%s811_s2] sm:$0xff]  ;;  %s245_s9 = scalar_select %p244_p11, %s650_s21, 1  ;;  %vm276_vm0 = vcmask 1041408   ;;  %vm272_vm1 = vcmask 31744   ;;  %vm355_vm2 = vcmask 1043456  }
  0x15   : > { %315 = vmatprep.mubr.bf16.mxu0 %v660_v0  ;;  %577 = vset.pattern.permute.xlu0 %v660_v0  ;;  %v345_v2 = vld [vmem:[%s813_s4] sm:$0xf]  ;;  %vm351_vm3 = vcmask 64512   ;;  %s661_s21 = smov [#allocation2]  }
  0x16   : > { %260 = vperm.xlu0 %577, %v257_v1   ;;  %394 = vmatprep.mubr.bf16.mxu1 %v660_v0  ;;  %s519_s12 = sshll.u32 %s245_s9, 2  ;;  %v255_v6 = vld [vmem:[%s810_s1] sm:$0xf]  ;;  %s425_s9 = sshll.u32 %s242_s8, 4  ;;  %s426_s9 = int_to_ptr.vmem [resolvable:$true] %s425_s9 }
  0x17   : > { %s251_s15 = scalar_lea.vmem %s809_s0, %s519_s12  ;;  %v342_v35 = vld [vmem:[%s812_s3] sm:$0x3]  ;;  %s769_s12 = scalar_lea.hbm %s814_s5, %s520_s7 }
  0x18   : > { %v509_v3 = vld.sshfl [vmem:[%s251_s15] sm:$0x33 pattern:$0x76325410]  ;;  %s582_s14 = scalar_lea.vmem %s426_s9, 128  ;;  %s586_s15 = sshll.u32 %s661_s21, 4  ;;  %s587_s15 = int_to_ptr.vmem [resolvable:$false] %s586_s15 }
  0x19   : > { %v271_v4 = vcombine.high %v509_v3, %v509_v3  ;;  %v278_v5 = vsel %vm276_vm0, %v509_v3, 0  ;;  %p583_p12 = scmp.ne.s32.totalorder %s426_s9, %s582_s14  ;;  %s588_s16 = scalar_lea.vmem %s587_s15, 256 }
  0x1a   : > { %348 = vperm.xlu0 %577, %v345_v2   ;;  %p589_p1 = scmp.lt.s32.totalorder %s426_s9, %s587_s15  ;;  %p590_p2 = scmp.lt.s32.totalorder %s588_s16, %s582_s14 }
  0x1b   : > { %510 = vmatprep.subr.msk.bf16.mxu0 %vm276_vm0, %v271_v4  ;;  %p584_p13 = pnand %p583_p12, %p732_p4 }
  0x1c   : > { %298 = vmatpush1.bf16.msra.mxu0 %v278_v5  ;;  %p591_p3 = por %p590_p2, %p589_p1 }
  0x1d   : > { %p585_p0 = pneg %p584_p13 }
  0x1f   : > { %511 = vmatmul.mubr.msk.bf16.vlgmr.msra.gmra.mxu0 %vm272_vm1, %v255_v6  ;;  %p592_p5 = pnand %p591_p3, %p585_p0 }
  0x91   : > { %v261_v7 = vpop.permute.xlu0 %260 }
  0x95   : > { %v349_v37 = vpop.permute.xlu0 %348 }
  0xdf   : > { %v317_v8 = vpop.f32.mrf.mxu0 }
  0xe0   : > { %v318_v9 = vadd.f32 %v317_v8, %v261_v7 }
  0xe1   : > { %v319_v10 = vpop.f32.mrf.mxu0 }
  0xe2   : > { %v324_v11 = vmul.f32 %v318_v9, %v318_v9  ;;  %v320_v12 = vadd.f32 %v319_v10, %v261_v7 }
  0xe3   : > { %v321_v13 = vpop.f32.mrf.mxu0 }
  0xe4   : > { %v326_v14 = vmul.f32 %v324_v11, %v318_v9  ;;  %v325_v15 = vmul.f32 %v320_v12, %v320_v12 }
  0xe5   : > { %v322_v16 = vpop.f32.mrf.mxu0 }
  0xe6   : > { %v328_v17 = vmul.f32 0.044715, %v326_v14  ;;  %v327_v18 = vmul.f32 %v325_v15, %v320_v12 }
  0xe8   : > { %v330_v19 = vadd.f32 %v328_v17, %v318_v9  ;;  %v329_v20 = vmul.f32 0.044715, %v327_v18 }
  0xea   : > { %v332_v21 = vmul.f32 0.7978846, %v330_v19  ;;  %v331_v22 = vadd.f32 %v329_v20, %v320_v12 }
  0xec   : > { %v333_v23 = vmul.f32 0.7978846, %v331_v22  ;;  %578 = vtanh.f32 %v332_v21 }
  0xee   : > { %580 = vtanh.f32 %v333_v23 }
  0xf9   : > { %v579_v24 = vpop.eup %578 }
  0xfa   : > { %v336_v25 = vadd.f32 1.0, %v579_v24 }
  0xfb   : > { %v581_v26 = vpop.eup %580 }
  0xfc   : > { %v337_v27 = vadd.f32 1.0, %v581_v26  ;;  %v338_v28 = vmul.f32 0.5, %v336_v25 }
  0xfe   : > { %v339_v29 = vmul.f32 0.5, %v337_v27  ;;  %v340_v30 = vmul.f32 %v338_v28, %v318_v9 }
 0x100   : > { %v341_v31 = vmul.f32 %v339_v29, %v320_v12  ;;  %v343_v32 = vpack.c.bf16 %v340_v30, %v340_v30 }
 0x102   : > { %v344_v33 = vpack.c.bf16 %v341_v31, %v341_v31  ;;  %v357_v34 = vsel %vm355_vm2, %v343_v32, 0 }
 0x104   : > { %512 = vmatprep.subr.msk.bf16.mxu1 %vm355_vm2, %v344_v33 }
 0x105   : > { %377 = vmatpush1.bf16.msra.mxu1 %v357_v34 }
 0x108   : > { %513 = vmatmul.mubr.msk.bf16.vlgmr.msra.gmra.mxu1 %vm351_vm3, %v342_v35 }
 0x1c8   : > { %v396_v36 = vpop.f32.mrf.mxu1 }
 0x1c9   : > { %v397_v39 = vadd.f32 %v396_v36, %v349_v37 }
 0x1ca   : > { %v398_v38 = vpop.f32.mrf.mxu1 }
 0x1cb   : > { %v399_v40 = vadd.f32 %v398_v38, %v349_v37 }
 0x1cc   : > { %v400_v41 = vpop.f32.mrf.mxu1 }
 0x1cd   : > { %v405_v42 = vcombine.low %v397_v39, %v399_v40 }
 0x1ce   : > { %v401_v43 = vpop.f32.mrf.mxu1 }
 0x1cf   : > { %407 = vst [vmem:[%s242_s8] sm:$0xff] %v405_v42 }
 0x1d0   : > { %595 = shalt.err (!%p592_p5)
}
 0x1d1   : > { %s596_s17 = scalar_lea.hbm %s769_s12, 128  ;;  %s600_s27 = scalar_lea.hbm %s814_s5, 256 }
 0x1d2   : > { %p597_p6 = scmp.ne.s32.totalorder %s769_s12, %s596_s17  ;;  %p601_p10 = scmp.lt.s32.totalorder %s769_s12, %s814_s5 }
 0x1d3   : > { %p602_p11 = scmp.lt.s32.totalorder %s600_s27, %s596_s17 }
 0x1d4   : > { %p598_p7 = pnand %p597_p6, %p732_p4 }
 0x1d5   : > { %p603_p12 = por %p602_p11, %p601_p10 }
 0x1d6   : > { %p599_p9 = pneg %p598_p7 }
 0x1d8   : > { %p604_p13 = pnand %p603_p12, %p599_p9 }
 0x1da   : > { %607 = shalt.err (!%p604_p13)
}
 0x1db   : > { %521 = dma.vmem_to_hbm [thread:$0]  (%p732_p4), %s426_s9, 128, %s769_s12, %s409_s13  }
 0x1dc PF: > { %p527_p0 = scmp.ge.s32.totalorder %s658_s23, 2  ;;  %s437_s8 = sand.u32 1, %s638_s18  }
 0x1dd   : > { %s438_s10 = scalar_lea.sflag [#allocation3], %s437_s8 }
 0x1de   : > { %p524_p1 = pnand %p527_p0, %p739_p8 }
 0x1e0   : > { %p525_p2 = pneg %p524_p1 }
 0x1e2   : > { %633 = dma.done.wait (%p525_p2), %s438_s10, 128  }
 0x1e3   : > { %635 = vsyncadd (%p525_p2), %s438_s10, 4294967168  ;;  %s18_s23 = sadd.s32 1, %s658_s23   ;;  %s817_s18 = smov %s642_s19 }
 0x1e4   : > { %p15_p3 = scmp.ge.s32.totalorder %s18_s23, 4   ;;  %s818_s19 = smov %s646_s20 }
 0x1e5   : > { %s819_s20 = smov %s745_s6  ;;  %s820_s21 = smov %s654_s22 }
 0x1e6   : > { %s821_s22 = smov %s823_s26  ;;  %17 = sbr.rel (!%p15_p3) target bundleno = 4 (0x4), region = 75 }
 0x1eb   :  { %443 = vsyncpa [#allocation3], 1 }
 0x1ec   :  { %445 = vsyncpa [#allocation3 + $0x1], 1 }

</bundles_post_ra>
